<compile_context>
chip_gen: v5e
topology: v5e:2x2
jax: 0.10.0
libtpu: 0.0.40
codegen_flags: <defaults>
</compile_context>

<pallas_src>
import functools

import jax
import jax.numpy as jnp
from jax.experimental import pallas as pl
from jax.experimental.pallas import tpu as pltpu

LATENT = 64
H1_ENC = 256
H2_ENC = 128
H1_DEC = 128
H2_DEC = 256
BN_EPS = 1e-5
SEG = 128          # lane width of each packed output segment / 128-lane slab

# Rows of the packed (11, 256) f32 BN-parameter / head-bias slab.
(_EG1, _EBE1, _EG2, _EBE2, _EG3, _EBE3,
 _DG1, _DBE1, _DG2, _DBE2, _HB) = range(11)


def _round_up(x, m):
    return (x + m - 1) // m * m


def autoencoder_kernel(obs_pad, state_ref, w256_ref, w128_ref, bn_ref,
                       alpha_ref, out_ref):
    """Whole encoder+decoder forward.  No grid: full-batch BN stats required."""

    def bn(h, grow, width):
        # Training-mode BatchNorm1d (biased variance), centred two-pass form.
        # Each gamma/beta row is read once per layer; the two remaining
        # (1,width)->(B,width) broadcasts (mean/var apply) are the minimum.
        gamma = bn_ref[grow:grow + 1, :width]
        beta = bn_ref[grow + 1:grow + 2, :width]
        mean = jnp.mean(h, axis=0, keepdims=True)
        hc = h - mean
        var = jnp.mean(hc * hc, axis=0, keepdims=True)
        scale = gamma * jax.lax.rsqrt(var + BN_EPS)       # rsqrt -> EUP slot
        return hc * scale + beta

    def prelu(h, i):
        a = alpha_ref[i]                                   # SMEM scalar read
        return jnp.where(h >= 0.0, h, a * h)

    def mm(a, w):
        # bf16 operands, f32 accumulation on the MXU.
        return jnp.dot(a.astype(jnp.bfloat16), w,
                       preferred_element_type=jnp.float32)

    # Static sublane views into the two packed bf16 weight slabs (all row
    # offsets are multiples of 16 -> zero-cost, tile-aligned slices).
    ew1 = w256_ref[0:obs_pad, :]
    dw2 = w256_ref[obs_pad:obs_pad + H1_DEC, :]
    ew2 = w128_ref[0:H1_ENC, :]
    ew3 = w128_ref[H1_ENC:H1_ENC + H2_ENC, :]
    dw1 = w128_ref[H1_ENC + H2_ENC:H1_ENC + H2_ENC + SEG, :]
    hw = w128_ref[H1_ENC + H2_ENC + SEG:H1_ENC + H2_ENC + SEG + H2_DEC, :]

    # ---------------- encoder ----------------
    # Pre-BN Linear biases omitted: exact no-op under training-mode BN.
    h = mm(state_ref[...], ew1)                 # (B, 256)
    h = prelu(bn(h, _EG1, H1_ENC), 0)
    h = mm(h, ew2)                              # (B, 128)
    h = prelu(bn(h, _EG2, H2_ENC), 1)
    h = mm(h, ew3)                              # (B, 128); lanes >= LATENT are 0
    z = bn(h, _EG3, SEG)                        # zero-padded gamma/beta keep them 0
    out_ref[:, 0:SEG] = z                       # direct full-vreg store (encoder_out)

    # ---------------- decoder ----------------
    d = mm(z, dw1)                              # (B, 128)
    d = prelu(bn(d, _DG1, H1_DEC), 2)
    d = mm(d, dw2)                              # (B, 256)
    d = prelu(bn(d, _DG2, H2_DEC), 3)
    # fc3 and transition_head fused into one matmul + fused (padded) bias row.
    heads = mm(d, hw) + bn_ref[_HB:_HB + 1, :SEG]
    out_ref[:, SEG:2 * SEG] = heads             # direct full-vreg store


def make_params(key, obs_dim, latent=LATENT):
    """Deterministic synthetic parameters (shapes mirror the PyTorch state_dict)."""
    def lin(k, fan_in, fan_out):
        k1, k2 = jax.random.split(k)
        bound = 1.0 / jnp.sqrt(fan_in)
        w = jax.random.uniform(k1, (fan_in, fan_out), jnp.float32, -bound, bound)
        b = jax.random.uniform(k2, (1, fan_out), jnp.float32, -bound, bound)
        return w, b

    ks = jax.random.split(key, 8)
    p = {}
    # encoder
    p["ew1"], p["eb1"] = lin(ks[0], obs_dim, H1_ENC)
    p["eg1"], p["ebe1"] = jnp.ones((1, H1_ENC)), jnp.zeros((1, H1_ENC))
    p["ea1"] = jnp.full((1,), 0.25, jnp.float32)
    p["ew2"], p["eb2"] = lin(ks[1], H1_ENC, H2_ENC)
    p["eg2"], p["ebe2"] = jnp.ones((1, H2_ENC)), jnp.zeros((1, H2_ENC))
    p["ea2"] = jnp.full((1,), 0.25, jnp.float32)
    p["ew3"], p["eb3"] = lin(ks[2], H2_ENC, latent)
    p["eg3"], p["ebe3"] = jnp.ones((1, latent)), jnp.zeros((1, latent))
    # decoder
    p["dw1"], p["db1"] = lin(ks[3], latent, H1_DEC)
    p["dg1"], p["dbe1"] = jnp.ones((1, H1_DEC)), jnp.zeros((1, H1_DEC))
    p["da1"] = jnp.full((1,), 0.25, jnp.float32)
    p["dw2"], p["db2"] = lin(ks[4], H1_DEC, H2_DEC)
    p["dg2"], p["dbe2"] = jnp.ones((1, H2_DEC)), jnp.zeros((1, H2_DEC))
    p["da2"] = jnp.full((1,), 0.25, jnp.float32)
    p["dw3"], p["db3"] = lin(ks[5], H2_DEC, obs_dim)   # fc3
    p["tw"], p["tb"] = lin(ks[6], H2_DEC, obs_dim)     # transition_head
    # episodic_return_head omitted: unused in forward().
    return p


def pack_params(params, obs_dim):
    """Collapse the 24 forward-pass tensors into 4 packed kernel arguments.
    Call ONCE and reuse the result across forward calls (no per-step repack)."""
    assert 2 * obs_dim <= SEG, "head packing assumes 2*obs_dim <= 128"
    obs_pad = _round_up(obs_dim, 16)            # bf16 sublane packing = 16 rows

    def pad_to(v, rows, cols):
        return jnp.pad(v, ((0, rows - v.shape[0]), (0, cols - v.shape[1])))

    # 256-lane bf16 slab: [ encoder.fc1 (obs_pad rows) | decoder.fc2 (128 rows) ]
    w256 = jnp.concatenate(
        [pad_to(params["ew1"], obs_pad, H1_ENC), params["dw2"]],
        axis=0).astype(jnp.bfloat16)
    # 128-lane bf16 slab:
    #   [ enc.fc2 (256) | enc.fc3 lane-padded (128) | dec.fc1 row-padded (128)
    #     | fc3|transition_head lane-padded (256) ]
    hw = jnp.concatenate([params["dw3"], params["tw"]], axis=1)   # (256, 2*obs)
    w128 = jnp.concatenate(
        [params["ew2"],
         pad_to(params["ew3"], H2_ENC, SEG),
         pad_to(params["dw1"], SEG, H1_DEC),
         pad_to(hw, H2_DEC, SEG)],
        axis=0).astype(jnp.bfloat16)

    # (11, 256) f32 slab: BN gamma/beta rows + fused head bias (f32 BN math).
    def row(v):
        return pad_to(v, 1, H1_ENC)

    hb = jnp.concatenate([params["db3"], params["tb"]], axis=1)   # (1, 2*obs)
    bn_slab = jnp.concatenate(
        [row(params["eg1"]), row(params["ebe1"]),
         row(params["eg2"]), row(params["ebe2"]),
         row(params["eg3"]), row(params["ebe3"]),
         row(params["dg1"]), row(params["dbe1"]),
         row(params["dg2"]), row(params["dbe2"]),
         row(hb)], axis=0)
    alphas = jnp.concatenate([params["ea1"], params["ea2"],
                              params["da1"], params["da2"]])      # (4,) -> SMEM
    # eb1/eb2/eb3/db1/db2 intentionally dropped (pre-BN biases are inert).
    return {"w256": w256, "w128": w128, "bn": bn_slab, "alphas": alphas,
            "obs_dim": obs_dim, "obs_pad": obs_pad}


@functools.partial(jax.jit, static_argnames=("obs_dim", "obs_pad"))
def _forward(state, w256, w128, bn_slab, alphas, *, obs_dim, obs_pad):
    b = state.shape[0]
    state_p = jnp.pad(state, ((0, 0), (0, obs_pad - obs_dim)))

    vmem = pl.BlockSpec(memory_space=pltpu.MemorySpace.VMEM)
    smem = pl.BlockSpec(memory_space=pltpu.MemorySpace.SMEM)

    args = (state_p, w256, w128, bn_slab, alphas)
    matmul_flops = 2 * b * (obs_pad * H1_ENC + H1_ENC * H2_ENC + H2_ENC * SEG
                            + SEG * H1_DEC + H1_DEC * H2_DEC + H2_DEC * SEG)
    out_bytes = b * 2 * SEG * 4
    bytes_accessed = sum(int(a.size) * a.dtype.itemsize for a in args) + out_bytes
    cost = pl.CostEstimate(
        flops=matmul_flops,
        transcendentals=H1_ENC + H2_ENC + SEG + H1_DEC + H2_DEC,  # 5 rsqrt rows
        bytes_accessed=bytes_accessed)

    packed = pl.pallas_call(
        functools.partial(autoencoder_kernel, obs_pad),
        out_shape=jax.ShapeDtypeStruct((b, 2 * SEG), jnp.float32),
        in_specs=[vmem, vmem, vmem, vmem, smem],
        out_specs=vmem,
        cost_estimate=cost,
    )(*args)

    enc_out = packed[:, :LATENT]
    cur_pred = packed[:, SEG:SEG + obs_dim]
    nxt_pred = packed[:, SEG + obs_dim:SEG + 2 * obs_dim]
    return enc_out, cur_pred, nxt_pred


def state_aggregation_autoencoder(state, packed_params):
    return _forward(state, packed_params["w256"], packed_params["w128"],
                    packed_params["bn"], packed_params["alphas"],
                    obs_dim=packed_params["obs_dim"],
                    obs_pad=packed_params["obs_pad"])


def _reference_f32(state, p):
    """Pure-JAX reference with the full module math (f32, pre-BN biases kept)."""
    hp = jax.lax.Precision.HIGHEST

    def bn(x, g, bta):
        m = jnp.mean(x, axis=0, keepdims=True)
        v = jnp.mean((x - m) ** 2, axis=0, keepdims=True)
        return g * (x - m) * jax.lax.rsqrt(v + BN_EPS) + bta

    def prelu(x, a):
        return jnp.where(x >= 0.0, x, a[0] * x)

    h = jnp.dot(state, p["ew1"], precision=hp) + p["eb1"]
    h = prelu(bn(h, p["eg1"], p["ebe1"]), p["ea1"])
    h = jnp.dot(h, p["ew2"], precision=hp) + p["eb2"]
    h = prelu(bn(h, p["eg2"], p["ebe2"]), p["ea2"])
    h = jnp.dot(h, p["ew3"], precision=hp) + p["eb3"]
    z = bn(h, p["eg3"], p["ebe3"])
    d = jnp.dot(z, p["dw1"], precision=hp) + p["db1"]
    d = prelu(bn(d, p["dg1"], p["dbe1"]), p["da1"])
    d = jnp.dot(d, p["dw2"], precision=hp) + p["db2"]
    d = prelu(bn(d, p["dg2"], p["dbe2"]), p["da2"])
    cur = jnp.dot(d, p["dw3"], precision=hp) + p["db3"]
    nxt = jnp.dot(d, p["tw"], precision=hp) + p["tb"]
    return z, cur, nxt


def _reference_bf16(state, p):
    """Precision-matched reference: bf16 matmul operands, f32 accumulation,
    pre-BN biases folded away (exact under training-mode BN)."""
    def mm(a, w):
        return jnp.dot(a.astype(jnp.bfloat16), w.astype(jnp.bfloat16),
                       preferred_element_type=jnp.float32)

    def bn(x, g, bta):
        m = jnp.mean(x, axis=0, keepdims=True)
        xc = x - m
        v = jnp.mean(xc * xc, axis=0, keepdims=True)
        return g * xc * jax.lax.rsqrt(v + BN_EPS) + bta

    def prelu(x, a):
        return jnp.where(x >= 0.0, x, a[0] * x)

    h = prelu(bn(mm(state, p["ew1"]), p["eg1"], p["ebe1"]), p["ea1"])
    h = prelu(bn(mm(h, p["ew2"]), p["eg2"], p["ebe2"]), p["ea2"])
    z = bn(mm(h, p["ew3"]), p["eg3"], p["ebe3"])
    d = prelu(bn(mm(z, p["dw1"]), p["dg1"], p["dbe1"]), p["da1"])
    d = prelu(bn(mm(d, p["dw2"]), p["dg2"], p["dbe2"]), p["da2"])
    cur = mm(d, p["dw3"]) + p["db3"]
    nxt = mm(d, p["tw"]) + p["tb"]
    return z, cur, nxt


if __name__ == "__main__":
    B = 8          # batch (BatchNorm1d needs B > 1 in training mode)
    OBS_DIM = 16   # prod(env.single_observation_space.shape)

    key = jax.random.PRNGKey(0)
    k_params, k_state = jax.random.split(key)
    params = make_params(k_params, OBS_DIM)
    packed_params = pack_params(params, OBS_DIM)   # pack once, reuse per call
    state = jax.random.normal(k_state, (B, OBS_DIM), jnp.float32)

    enc_out, cur_pred, nxt_pred = state_aggregation_autoencoder(state, packed_params)
    jax.block_until_ready((enc_out, cur_pred, nxt_pred))

    assert enc_out.shape == (B, LATENT)
    assert cur_pred.shape == (B, OBS_DIM)
    assert nxt_pred.shape == (B, OBS_DIM)

    # Tight check vs. a precision-matched (bf16-operand) pure-JAX reference,
    # loose sanity check vs. the full-f32 module math.
    z_b, cur_b, nxt_b = _reference_bf16(state, params)
    z_f, cur_f, nxt_f = _reference_f32(state, params)
    for a, rb, rf in ((enc_out, z_b, z_f), (cur_pred, cur_b, cur_f),
                      (nxt_pred, nxt_b, nxt_f)):
        assert bool(jnp.all(jnp.isfinite(a)))
        assert bool(jnp.allclose(a, rb, rtol=1e-2, atol=1e-2))
        assert bool(jnp.allclose(a, rf, rtol=5e-2, atol=5e-2))

    print("KERNEL_OK")
</pallas_src>

<mosaic_0001>
module attributes {stable_mosaic.version = 11 : i64} {
  func.func @autoencoder_kernel(%arg0: memref<8x16xf32, #tpu.memory_space<vmem>>, %arg1: memref<144x256xbf16, #tpu.memory_space<vmem>>, %arg2: memref<768x128xbf16, #tpu.memory_space<vmem>>, %arg3: memref<11x256xf32, #tpu.memory_space<vmem>>, %arg4: memref<4xf32, #tpu.memory_space<smem>>, %arg5: memref<8x256xf32, #tpu.memory_space<vmem>>) attributes {dimension_semantics = [], scalar_prefetch = 0 : i64, scratch_operands = 0 : i64, tpu.core_type = #tpu.core_type<tc>} {
    %c0 = arith.constant 0 : index
    %c0_0 = arith.constant 0 : index
    %0 = vector.load %arg1[%c0, %c0_0] : memref<144x256xbf16, #tpu.memory_space<vmem>>, vector<16x256xbf16>
    %c16 = arith.constant 16 : index
    %c0_1 = arith.constant 0 : index
    %1 = vector.load %arg1[%c16, %c0_1] : memref<144x256xbf16, #tpu.memory_space<vmem>>, vector<128x256xbf16>
    %c0_2 = arith.constant 0 : index
    %c0_3 = arith.constant 0 : index
    %2 = vector.load %arg2[%c0_2, %c0_3] : memref<768x128xbf16, #tpu.memory_space<vmem>>, vector<256x128xbf16>
    %c256 = arith.constant 256 : index
    %c0_4 = arith.constant 0 : index
    %3 = vector.load %arg2[%c256, %c0_4] : memref<768x128xbf16, #tpu.memory_space<vmem>>, vector<128x128xbf16>
    %c384 = arith.constant 384 : index
    %c0_5 = arith.constant 0 : index
    %4 = vector.load %arg2[%c384, %c0_5] : memref<768x128xbf16, #tpu.memory_space<vmem>>, vector<128x128xbf16>
    %c512 = arith.constant 512 : index
    %c0_6 = arith.constant 0 : index
    %5 = vector.load %arg2[%c512, %c0_6] : memref<768x128xbf16, #tpu.memory_space<vmem>>, vector<256x128xbf16>
    %c0_7 = arith.constant 0 : index
    %c0_8 = arith.constant 0 : index
    %6 = vector.load %arg0[%c0_7, %c0_8] : memref<8x16xf32, #tpu.memory_space<vmem>>, vector<8x16xf32>
    %7 = arith.truncf %6 : vector<8x16xf32> to vector<8x16xbf16>
    %cst = arith.constant dense<0.000000e+00> : vector<8x256xf32>
    %8 = tpu.matmul %7, %0, %cst {dimension_numbers = #tpu.dot_dimension_numbers<[1], [0], [0], [1], [0, 0, 1, 1], [], []>} : vector<8x16xbf16>, vector<16x256xbf16>, vector<8x256xf32> -> vector<8x256xf32>
    %c0_9 = arith.constant 0 : index
    %c0_10 = arith.constant 0 : index
    %9 = vector.load %arg3[%c0_9, %c0_10] : memref<11x256xf32, #tpu.memory_space<vmem>>, vector<1x256xf32>
    %c1 = arith.constant 1 : index
    %c0_11 = arith.constant 0 : index
    %10 = vector.load %arg3[%c1, %c0_11] : memref<11x256xf32, #tpu.memory_space<vmem>>, vector<1x256xf32>
    %cst_12 = arith.constant dense<0.000000e+00> : vector<256xf32>
    %11 = vector.multi_reduction <add>, %8, %cst_12 [0] : vector<8x256xf32> to vector<256xf32>
    %12 = vector.shape_cast %11 : vector<256xf32> to vector<1x256xf32>
    %cst_13 = arith.constant 8.000000e+00 : f32
    %13 = vector.broadcast %cst_13 : f32 to vector<1x256xf32>
    %14 = arith.divf %12, %13 : vector<1x256xf32>
    %15 = vector.broadcast %14 : vector<1x256xf32> to vector<8x256xf32>
    %16 = arith.subf %8, %15 : vector<8x256xf32>
    %17 = arith.mulf %16, %16 : vector<8x256xf32>
    %cst_14 = arith.constant dense<0.000000e+00> : vector<256xf32>
    %18 = vector.multi_reduction <add>, %17, %cst_14 [0] : vector<8x256xf32> to vector<256xf32>
    %19 = vector.shape_cast %18 : vector<256xf32> to vector<1x256xf32>
    %cst_15 = arith.constant 8.000000e+00 : f32
    %20 = vector.broadcast %cst_15 : f32 to vector<1x256xf32>
    %21 = arith.divf %19, %20 : vector<1x256xf32>
    %cst_16 = arith.constant 9.99999974E-6 : f32
    %22 = vector.broadcast %cst_16 : f32 to vector<1x256xf32>
    %23 = arith.addf %21, %22 : vector<1x256xf32>
    %24 = math.rsqrt %23 : vector<1x256xf32>
    %25 = arith.mulf %9, %24 : vector<1x256xf32>
    %26 = vector.broadcast %25 : vector<1x256xf32> to vector<8x256xf32>
    %27 = arith.mulf %16, %26 : vector<8x256xf32>
    %28 = vector.broadcast %10 : vector<1x256xf32> to vector<8x256xf32>
    %29 = arith.addf %27, %28 : vector<8x256xf32>
    %c0_17 = arith.constant 0 : index
    %30 = memref.load %arg4[%c0_17] : memref<4xf32, #tpu.memory_space<smem>>
    %cst_18 = arith.constant 0.000000e+00 : f32
    %31 = vector.broadcast %cst_18 : f32 to vector<8x256xf32>
    %32 = arith.cmpf oge, %29, %31 : vector<8x256xf32>
    %33 = vector.broadcast %30 : f32 to vector<8x256xf32>
    %34 = arith.mulf %33, %29 : vector<8x256xf32>
    %35 = arith.select %32, %29, %34 : vector<8x256xi1>, vector<8x256xf32>
    %36 = arith.truncf %35 : vector<8x256xf32> to vector<8x256xbf16>
    %cst_19 = arith.constant dense<0.000000e+00> : vector<8x128xf32>
    %37 = tpu.matmul %36, %2, %cst_19 {dimension_numbers = #tpu.dot_dimension_numbers<[1], [0], [0], [1], [0, 0, 1, 1], [], []>} : vector<8x256xbf16>, vector<256x128xbf16>, vector<8x128xf32> -> vector<8x128xf32>
    %c2 = arith.constant 2 : index
    %c0_20 = arith.constant 0 : index
    %38 = vector.load %arg3[%c2, %c0_20] : memref<11x256xf32, #tpu.memory_space<vmem>>, vector<1x128xf32>
    %c3 = arith.constant 3 : index
    %c0_21 = arith.constant 0 : index
    %39 = vector.load %arg3[%c3, %c0_21] : memref<11x256xf32, #tpu.memory_space<vmem>>, vector<1x128xf32>
    %cst_22 = arith.constant dense<0.000000e+00> : vector<128xf32>
    %40 = vector.multi_reduction <add>, %37, %cst_22 [0] : vector<8x128xf32> to vector<128xf32>
    %41 = vector.shape_cast %40 : vector<128xf32> to vector<1x128xf32>
    %cst_23 = arith.constant 8.000000e+00 : f32
    %42 = vector.broadcast %cst_23 : f32 to vector<1x128xf32>
    %43 = arith.divf %41, %42 : vector<1x128xf32>
    %44 = vector.broadcast %43 : vector<1x128xf32> to vector<8x128xf32>
    %45 = arith.subf %37, %44 : vector<8x128xf32>
    %46 = arith.mulf %45, %45 : vector<8x128xf32>
    %cst_24 = arith.constant dense<0.000000e+00> : vector<128xf32>
    %47 = vector.multi_reduction <add>, %46, %cst_24 [0] : vector<8x128xf32> to vector<128xf32>
    %48 = vector.shape_cast %47 : vector<128xf32> to vector<1x128xf32>
    %cst_25 = arith.constant 8.000000e+00 : f32
    %49 = vector.broadcast %cst_25 : f32 to vector<1x128xf32>
    %50 = arith.divf %48, %49 : vector<1x128xf32>
    %cst_26 = arith.constant 9.99999974E-6 : f32
    %51 = vector.broadcast %cst_26 : f32 to vector<1x128xf32>
    %52 = arith.addf %50, %51 : vector<1x128xf32>
    %53 = math.rsqrt %52 : vector<1x128xf32>
    %54 = arith.mulf %38, %53 : vector<1x128xf32>
    %55 = vector.broadcast %54 : vector<1x128xf32> to vector<8x128xf32>
    %56 = arith.mulf %45, %55 : vector<8x128xf32>
    %57 = vector.broadcast %39 : vector<1x128xf32> to vector<8x128xf32>
    %58 = arith.addf %56, %57 : vector<8x128xf32>
    %c1_27 = arith.constant 1 : index
    %59 = memref.load %arg4[%c1_27] : memref<4xf32, #tpu.memory_space<smem>>
    %cst_28 = arith.constant 0.000000e+00 : f32
    %60 = vector.broadcast %cst_28 : f32 to vector<8x128xf32>
    %61 = arith.cmpf oge, %58, %60 : vector<8x128xf32>
    %62 = vector.broadcast %59 : f32 to vector<8x128xf32>
    %63 = arith.mulf %62, %58 : vector<8x128xf32>
    %64 = arith.select %61, %58, %63 : vector<8x128xi1>, vector<8x128xf32>
    %65 = arith.truncf %64 : vector<8x128xf32> to vector<8x128xbf16>
    %cst_29 = arith.constant dense<0.000000e+00> : vector<8x128xf32>
    %66 = tpu.matmul %65, %3, %cst_29 {dimension_numbers = #tpu.dot_dimension_numbers<[1], [0], [0], [1], [0, 0, 1, 1], [], []>} : vector<8x128xbf16>, vector<128x128xbf16>, vector<8x128xf32> -> vector<8x128xf32>
    %c4 = arith.constant 4 : index
    %c0_30 = arith.constant 0 : index
    %67 = vector.load %arg3[%c4, %c0_30] : memref<11x256xf32, #tpu.memory_space<vmem>>, vector<1x128xf32>
    %c5 = arith.constant 5 : index
    %c0_31 = arith.constant 0 : index
    %68 = vector.load %arg3[%c5, %c0_31] : memref<11x256xf32, #tpu.memory_space<vmem>>, vector<1x128xf32>
    %cst_32 = arith.constant dense<0.000000e+00> : vector<128xf32>
    %69 = vector.multi_reduction <add>, %66, %cst_32 [0] : vector<8x128xf32> to vector<128xf32>
    %70 = vector.shape_cast %69 : vector<128xf32> to vector<1x128xf32>
    %cst_33 = arith.constant 8.000000e+00 : f32
    %71 = vector.broadcast %cst_33 : f32 to vector<1x128xf32>
    %72 = arith.divf %70, %71 : vector<1x128xf32>
    %73 = vector.broadcast %72 : vector<1x128xf32> to vector<8x128xf32>
    %74 = arith.subf %66, %73 : vector<8x128xf32>
    %75 = arith.mulf %74, %74 : vector<8x128xf32>
    %cst_34 = arith.constant dense<0.000000e+00> : vector<128xf32>
    %76 = vector.multi_reduction <add>, %75, %cst_34 [0] : vector<8x128xf32> to vector<128xf32>
    %77 = vector.shape_cast %76 : vector<128xf32> to vector<1x128xf32>
    %cst_35 = arith.constant 8.000000e+00 : f32
    %78 = vector.broadcast %cst_35 : f32 to vector<1x128xf32>
    %79 = arith.divf %77, %78 : vector<1x128xf32>
    %cst_36 = arith.constant 9.99999974E-6 : f32
    %80 = vector.broadcast %cst_36 : f32 to vector<1x128xf32>
    %81 = arith.addf %79, %80 : vector<1x128xf32>
    %82 = math.rsqrt %81 : vector<1x128xf32>
    %83 = arith.mulf %67, %82 : vector<1x128xf32>
    %84 = vector.broadcast %83 : vector<1x128xf32> to vector<8x128xf32>
    %85 = arith.mulf %74, %84 : vector<8x128xf32>
    %86 = vector.broadcast %68 : vector<1x128xf32> to vector<8x128xf32>
    %87 = arith.addf %85, %86 : vector<8x128xf32>
    %c0_37 = arith.constant 0 : index
    %c0_38 = arith.constant 0 : index
    %88 = vector.load %arg5[%c0_37, %c0_38] : memref<8x256xf32, #tpu.memory_space<vmem>>, vector<8x128xf32>
    tpu.vector_store %arg5[%c0_37, %c0_38], %87 {strides = array<i32>} : memref<8x256xf32, #tpu.memory_space<vmem>>, vector<8x128xf32>,
    %89 = arith.truncf %87 : vector<8x128xf32> to vector<8x128xbf16>
    %cst_39 = arith.constant dense<0.000000e+00> : vector<8x128xf32>
    %90 = tpu.matmul %89, %4, %cst_39 {dimension_numbers = #tpu.dot_dimension_numbers<[1], [0], [0], [1], [0, 0, 1, 1], [], []>} : vector<8x128xbf16>, vector<128x128xbf16>, vector<8x128xf32> -> vector<8x128xf32>
    %c6 = arith.constant 6 : index
    %c0_40 = arith.constant 0 : index
    %91 = vector.load %arg3[%c6, %c0_40] : memref<11x256xf32, #tpu.memory_space<vmem>>, vector<1x128xf32>
    %c7 = arith.constant 7 : index
    %c0_41 = arith.constant 0 : index
    %92 = vector.load %arg3[%c7, %c0_41] : memref<11x256xf32, #tpu.memory_space<vmem>>, vector<1x128xf32>
    %cst_42 = arith.constant dense<0.000000e+00> : vector<128xf32>
    %93 = vector.multi_reduction <add>, %90, %cst_42 [0] : vector<8x128xf32> to vector<128xf32>
    %94 = vector.shape_cast %93 : vector<128xf32> to vector<1x128xf32>
    %cst_43 = arith.constant 8.000000e+00 : f32
    %95 = vector.broadcast %cst_43 : f32 to vector<1x128xf32>
    %96 = arith.divf %94, %95 : vector<1x128xf32>
    %97 = vector.broadcast %96 : vector<1x128xf32> to vector<8x128xf32>
    %98 = arith.subf %90, %97 : vector<8x128xf32>
    %99 = arith.mulf %98, %98 : vector<8x128xf32>
    %cst_44 = arith.constant dense<0.000000e+00> : vector<128xf32>
    %100 = vector.multi_reduction <add>, %99, %cst_44 [0] : vector<8x128xf32> to vector<128xf32>
    %101 = vector.shape_cast %100 : vector<128xf32> to vector<1x128xf32>
    %cst_45 = arith.constant 8.000000e+00 : f32
    %102 = vector.broadcast %cst_45 : f32 to vector<1x128xf32>
    %103 = arith.divf %101, %102 : vector<1x128xf32>
    %cst_46 = arith.constant 9.99999974E-6 : f32
    %104 = vector.broadcast %cst_46 : f32 to vector<1x128xf32>
    %105 = arith.addf %103, %104 : vector<1x128xf32>
    %106 = math.rsqrt %105 : vector<1x128xf32>
    %107 = arith.mulf %91, %106 : vector<1x128xf32>
    %108 = vector.broadcast %107 : vector<1x128xf32> to vector<8x128xf32>
    %109 = arith.mulf %98, %108 : vector<8x128xf32>
    %110 = vector.broadcast %92 : vector<1x128xf32> to vector<8x128xf32>
    %111 = arith.addf %109, %110 : vector<8x128xf32>
    %c2_47 = arith.constant 2 : index
    %112 = memref.load %arg4[%c2_47] : memref<4xf32, #tpu.memory_space<smem>>
    %cst_48 = arith.constant 0.000000e+00 : f32
    %113 = vector.broadcast %cst_48 : f32 to vector<8x128xf32>
    %114 = arith.cmpf oge, %111, %113 : vector<8x128xf32>
    %115 = vector.broadcast %112 : f32 to vector<8x128xf32>
    %116 = arith.mulf %115, %111 : vector<8x128xf32>
    %117 = arith.select %114, %111, %116 : vector<8x128xi1>, vector<8x128xf32>
    %118 = arith.truncf %117 : vector<8x128xf32> to vector<8x128xbf16>
    %cst_49 = arith.constant dense<0.000000e+00> : vector<8x256xf32>
    %119 = tpu.matmul %118, %1, %cst_49 {dimension_numbers = #tpu.dot_dimension_numbers<[1], [0], [0], [1], [0, 0, 1, 1], [], []>} : vector<8x128xbf16>, vector<128x256xbf16>, vector<8x256xf32> -> vector<8x256xf32>
    %c8 = arith.constant 8 : index
    %c0_50 = arith.constant 0 : index
    %120 = vector.load %arg3[%c8, %c0_50] : memref<11x256xf32, #tpu.memory_space<vmem>>, vector<1x256xf32>
    %c9 = arith.constant 9 : index
    %c0_51 = arith.constant 0 : index
    %121 = vector.load %arg3[%c9, %c0_51] : memref<11x256xf32, #tpu.memory_space<vmem>>, vector<1x256xf32>
    %cst_52 = arith.constant dense<0.000000e+00> : vector<256xf32>
    %122 = vector.multi_reduction <add>, %119, %cst_52 [0] : vector<8x256xf32> to vector<256xf32>
    %123 = vector.shape_cast %122 : vector<256xf32> to vector<1x256xf32>
    %cst_53 = arith.constant 8.000000e+00 : f32
    %124 = vector.broadcast %cst_53 : f32 to vector<1x256xf32>
    %125 = arith.divf %123, %124 : vector<1x256xf32>
    %126 = vector.broadcast %125 : vector<1x256xf32> to vector<8x256xf32>
    %127 = arith.subf %119, %126 : vector<8x256xf32>
    %128 = arith.mulf %127, %127 : vector<8x256xf32>
    %cst_54 = arith.constant dense<0.000000e+00> : vector<256xf32>
    %129 = vector.multi_reduction <add>, %128, %cst_54 [0] : vector<8x256xf32> to vector<256xf32>
    %130 = vector.shape_cast %129 : vector<256xf32> to vector<1x256xf32>
    %cst_55 = arith.constant 8.000000e+00 : f32
    %131 = vector.broadcast %cst_55 : f32 to vector<1x256xf32>
    %132 = arith.divf %130, %131 : vector<1x256xf32>
    %cst_56 = arith.constant 9.99999974E-6 : f32
    %133 = vector.broadcast %cst_56 : f32 to vector<1x256xf32>
    %134 = arith.addf %132, %133 : vector<1x256xf32>
    %135 = math.rsqrt %134 : vector<1x256xf32>
    %136 = arith.mulf %120, %135 : vector<1x256xf32>
    %137 = vector.broadcast %136 : vector<1x256xf32> to vector<8x256xf32>
    %138 = arith.mulf %127, %137 : vector<8x256xf32>
    %139 = vector.broadcast %121 : vector<1x256xf32> to vector<8x256xf32>
    %140 = arith.addf %138, %139 : vector<8x256xf32>
    %c3_57 = arith.constant 3 : index
    %141 = memref.load %arg4[%c3_57] : memref<4xf32, #tpu.memory_space<smem>>
    %cst_58 = arith.constant 0.000000e+00 : f32
    %142 = vector.broadcast %cst_58 : f32 to vector<8x256xf32>
    %143 = arith.cmpf oge, %140, %142 : vector<8x256xf32>
    %144 = vector.broadcast %141 : f32 to vector<8x256xf32>
    %145 = arith.mulf %144, %140 : vector<8x256xf32>
    %146 = arith.select %143, %140, %145 : vector<8x256xi1>, vector<8x256xf32>
    %147 = arith.truncf %146 : vector<8x256xf32> to vector<8x256xbf16>
    %cst_59 = arith.constant dense<0.000000e+00> : vector<8x128xf32>
    %148 = tpu.matmul %147, %5, %cst_59 {dimension_numbers = #tpu.dot_dimension_numbers<[1], [0], [0], [1], [0, 0, 1, 1], [], []>} : vector<8x256xbf16>, vector<256x128xbf16>, vector<8x128xf32> -> vector<8x128xf32>
    %c10 = arith.constant 10 : index
    %c0_60 = arith.constant 0 : index
    %149 = vector.load %arg3[%c10, %c0_60] : memref<11x256xf32, #tpu.memory_space<vmem>>, vector<1x128xf32>
    %150 = vector.broadcast %149 : vector<1x128xf32> to vector<8x128xf32>
    %151 = arith.addf %148, %150 : vector<8x128xf32>
    %c0_61 = arith.constant 0 : index
    %c128 = arith.constant 128 : index
    %152 = vector.load %arg5[%c0_61, %c128] : memref<8x256xf32, #tpu.memory_space<vmem>>, vector<8x128xf32>
    tpu.vector_store %arg5[%c0_61, %c128], %151 {strides = array<i32>} : memref<8x256xf32, #tpu.memory_space<vmem>>, vector<8x128xf32>,
    return
  }
}

</mosaic_0001>

<bundles_post_ra>
// kernel: _forward.1
= control target key start
LH: loop header
LB: loop body
LE: loop exit
PB: predicated region body
PF: predicated region fallthrough
CT: control target
= control target key end

     0   :  { %10 = vsyncpa [#allocation3], 0  ;;  %s1606_s0 = inlined_call_operand.hbm [shape: f32[8,16], index: 0, kind: input, shape index: {}]   ;;  %s1607_s1 = inlined_call_operand.hbm [shape: bf16[144,256], index: 1, kind: input, shape index: {}]   ;;  %s1608_s2 = inlined_call_operand.hbm [shape: bf16[768,128], index: 2, kind: input, shape index: {}]   ;;  %s1609_s3 = inlined_call_operand.hbm [shape: f32[11,256], index: 3, kind: input, shape index: {}]   ;;  %s1610_s4 = inlined_call_operand.vmem [shape: f32[4], index: 4, kind: input, shape index: {}]   ;;  %s1611_s5 = inlined_call_operand.vmem [shape: f32[8,256], index: 5, kind: output, shape index: {}]  }
   0x1   :  { %11 = vsyncpa [#allocation6], 0 }
   0x2   :  { %12 = vsyncpa [#allocation9], 0  ;;  %s29_s20 = sshll.u32 %s1607_s1, 4  ;;  %s30_s20 = int_to_ptr.hbm [resolvable:$true] %s29_s20 }
   0x3   :  { %13 = vsyncpa [#allocation4], 0  ;;  %s1505_s21 = smov [#allocation5]   ;;  %s19_s25 = sshll.u32 %s1606_s0, 4  ;;  %s20_s25 = int_to_ptr.hbm [resolvable:$true] %s19_s25 }
   0x4   :  { %s31_s22 = sshll.u32 %s1505_s21, 4  ;;  %s1506_s26 = smov 128   ;;  %s32_s22 = int_to_ptr.vmem [resolvable:$true] %s31_s22 }
   0x5   :  { %s1507_s27 = smov 8   ;;  %s1508_s28 = smov [#allocation2]  }
   0x6   :  { %37 = dma.hbm_to_vmem [thread:$0]  %s30_s20, 2304, %s32_s22, [#allocation6], %s1506_s26, %s1506_s26, %s1507_s27  }
   0x7   :  { %s21_s29 = sshll.u32 %s1508_s28, 4  ;;  %s42_s7 = sshll.u32 %s1608_s2, 4  ;;  %s22_s29 = int_to_ptr.vmem [resolvable:$true] %s21_s29  ;;  %s43_s7 = int_to_ptr.hbm [resolvable:$true] %s42_s7 }
   0x8   :  { %24 = dma.hbm_to_vmem [thread:$0]  %s20_s25, 128, %s22_s29, [#allocation3]  }
   0x9   :  { %s1509_s1 = smov [#allocation7]   ;;  %s55_s0 = sshll.u32 %s1609_s3, 4  ;;  %s56_s0 = int_to_ptr.hbm [resolvable:$true] %s55_s0 }
   0xa   :  { %s44_s8 = sshll.u32 %s1509_s1, 4  ;;  %s1510_s11 = smov 64   ;;  %s45_s8 = int_to_ptr.vmem [resolvable:$true] %s44_s8 }
   0xb   :  { %s1511_s12 = smov 4   ;;  %s1512_s13 = smov [#allocation8]  }
   0xc   :  { %50 = dma.hbm_to_vmem [thread:$0]  %s43_s7, 6144, %s45_s8, [#allocation6], %s1510_s11, %s1510_s11, %s1511_s12  }
   0xd   :  { %s57_s14 = sshll.u32 %s1512_s13, 4  ;;  %s1513_s15 = smov 256   ;;  %s58_s14 = int_to_ptr.vmem [resolvable:$true] %s57_s14 }
   0xe   :  { %s1514_s16 = smov 16   ;;  %s69_s18 = sshll.u32 %s1610_s4, 4  ;;  %s70_s18 = int_to_ptr.vmem [resolvable:$true] %s69_s18 }
   0xf   :  { %63 = dma.hbm_to_vmem [thread:$0]  %s56_s0, 512, %s58_s14, [#allocation9], %s1513_s15, %s1513_s15, %s1514_s16  }
  0x10   :  { %s1515_s19 = smov [#allocation10]  }
  0x11   :  { %72 = dma.vmem_to_smem %s70_s18, 16, %s1515_s19, [#allocation4]  }
  0x12   :  { %1497 = dma.done.wait [#allocation3], 128  }
  0x13   :  { %1498 = vsyncadd [#allocation3], 4294967168 }
  0x14   :  { %1499 = dma.done.wait [#allocation6], 8448  }
  0x15   :  { %1500 = vsyncadd [#allocation6], 4294958848 }
  0x16   :  { %1501 = dma.done.wait [#allocation9], 512  }
  0x17   :  { %1502 = vsyncadd [#allocation9], 4294966784 }
  0x18   :  { %1503 = dma.done.wait [#allocation4], 16  }
  0x19   :  { %1504 = vsyncadd [#allocation4], 4294967280 }
  0x1a   :  { %93 = sfence }
  0x1b   :  { %v1028_v0 = vld [vmem:[#allocation5] sm:$0xf]  ;;  %v1296_v1 = vld [vmem:[#allocation5 + $0x4] sm:$0xf0]  ;;  %v1295_v2 = vld [vmem:[#allocation5 + $0x4] sm:$0xf] }
  0x1c   :  { %v1029_v3 = vor.u32 %v1296_v1, %v1028_v0  ;;  %v1030_v4 = vld [vmem:[#allocation5 + $0x8] sm:$0xf0]  ;;  %v209_v5 = vld [vmem:[#allocation2] sm:$0xff]  ;;  %vm221_vm0 = vcmask 130048   ;;  %v1516_v8 = vmov 8.0   ;;  %v1319_v29 = vld [vmem:[#allocation7 + $0x30] sm:$0xff] }
  0x1d   :  { %v1033_v6 = vor.u32 %v1295_v2, %v1030_v4  ;;  %v210_v7 = vpack.c.bf16 %v209_v5, %v209_v5  ;;  %1373 = vrcp.f32 %v1516_v8  ;;  %v1320_v20 = vld [vmem:[#allocation7 + $0x38] sm:$0xff]  ;;  %v1327_v30 = vld [vmem:[#allocation7 + $0x70] sm:$0xff]  ;;  %v1318_v36 = vld [vmem:[#allocation7 + $0x28] sm:$0xff]  ;;  %vm318_vm7 = vcmask 1040384   ;;  %s336_s3 = sld [smem:[#allocation10]] }
  0x1e   :  { %232 = vmatpush.bf16.msra.mxu0 %v1029_v3  ;;  %v1328_v21 = vld [vmem:[#allocation7 + $0x78] sm:$0xff]  ;;  %442 = vmatpush.bf16.msra.mxu2 %v1320_v20  ;;  %v1326_v37 = vld [vmem:[#allocation7 + $0x68] sm:$0xff]  ;;  %v1317_v42 = vld [vmem:[#allocation7 + $0x20] sm:$0xff]  ;;  %s1100_s4 = sld [smem:[#allocation10 + $0x1]] }
  0x1f   :  { %245 = vmatpush.bf16.msra.mxu1 %v1033_v6  ;;  %455 = vmatpush.bf16.msra.mxu3 %v1328_v21  ;;  %v1325_v43 = vld [vmem:[#allocation7 + $0x60] sm:$0xff]  ;;  %v1316_v48 = vld [vmem:[#allocation7 + $0x18] sm:$0xff]  ;;  %v1315_v54 = vld [vmem:[#allocation7 + $0x10] sm:$0xff]  ;;  %s1165_s22 = sld [smem:[#allocation10 + $0x2]] }
  0x20   :  { %v1324_v49 = vld [vmem:[#allocation7 + $0x58] sm:$0xff]  ;;  %v1323_v55 = vld [vmem:[#allocation7 + $0x50] sm:$0xff]  ;;  %v1314_v60 = vld [vmem:[#allocation7 + $0x8] sm:$0xff]  ;;  %s1230_s23 = sld [smem:[#allocation10 + $0x3]] }
  0x21   :  { %1034 = vmatmul.msk.bf16.vlgmr.msra.gmra.mxu0 %vm221_vm0, %v210_v7  ;;  %v1322_v61 = vld [vmem:[#allocation7 + $0x48] sm:$0xff]  ;;  %v1313_v0 = vld [vmem:[#allocation7] sm:$0xff] }
  0x22   :  { %1035 = vmatmul.msk.bf16.vlgmr.msra.gmra.mxu1 %vm221_vm0, %v210_v7  ;;  %443 = vmatpush.bf16.msra.mxu2 %v1319_v29  ;;  %v1321_v1 = vld [vmem:[#allocation7 + $0x40] sm:$0xff] }
  0x23   :  { %v1374_v9 = vpop.eup %1373  ;;  %456 = vmatpush.bf16.msra.mxu3 %v1327_v30  ;;  %v339_v30 = vstv %s336_s3 }
  0x24   :  { %v267_v10 = vmul.f32 8.0, %v1374_v9  ;;  %vm271_vm1 = vweird.f32 %v1374_v9 }
  0x26   :  { %v268_v11 = vsub.f32 1.0, %v267_v10  ;;  %444 = vmatpush.bf16.msra.mxu2 %v1318_v36 }
  0x27   :  { %457 = vmatpush.bf16.msra.mxu3 %v1326_v37 }
  0x28   :  { %v269_v15 = vmul.f32 %v1374_v9, %v268_v11 }
  0x2a   :  { %v270_v22 = vadd.f32 %v1374_v9, %v269_v15  ;;  %445 = vmatpush.bf16.msra.mxu2 %v1317_v42 }
  0x2b   :  { %458 = vmatpush.bf16.msra.mxu3 %v1325_v43 }
  0x2c   :  { %v1562_v31 = vsel %vm271_vm1, %v1374_v9, %v270_v22  ;;  %v253_v22 = vld [vmem:[#allocation8 + $0x1] ss:$8 sm:$0x3] }
  0x2e   :  { %446 = vmatpush.bf16.msra.mxu2 %v1316_v48 }
  0x2f   :  { %459 = vmatpush.bf16.msra.mxu3 %v1324_v49 }
  0x32   :  { %447 = vmatpush.bf16.msra.mxu2 %v1315_v54  ;;  %v1333_v54 = vld [vmem:[#allocation7 + $0xa0] sm:$0xff] }
  0x33   :  { %460 = vmatpush.bf16.msra.mxu3 %v1323_v55 }
  0x36   :  { %448 = vmatpush.bf16.msra.mxu2 %v1314_v60  ;;  %v1331_v60 = vld [vmem:[#allocation7 + $0x90] sm:$0xff] }
  0x37   :  { %461 = vmatpush.bf16.msra.mxu3 %v1322_v61 }
  0x3a   :  { %449 = vmatpush.bf16.msra.mxu2 %v1313_v0 }
  0x3b   :  { %462 = vmatpush.bf16.msra.mxu3 %v1321_v1  ;;  %v1329_v1 = vld [vmem:[#allocation7 + $0x80] sm:$0xff] }
  0x9e   :  { %v234_v12 = vpop.f32.mrf.mxu0 }
  0x9f   :  { %v254_v13 = vrot.slane %v234_v12, 4  ;;  %v247_v14 = vpop.f32.mrf.mxu1 }
  0xa0   :  { %v260_v16 = vrot.slane %v247_v14, 4 }
  0xa1   :  { %v255_v17 = vadd.f32 %v254_v13, %v234_v12 }
  0xa2   :  { %v261_v18 = vadd.f32 %v260_v16, %v247_v14 }
  0xa3   :  { %v256_v19 = vrot.slane %v255_v17, 2 }
  0xa4   :  { %v262_v23 = vrot.slane %v261_v18, 2 }
  0xa5   :  { %v257_v24 = vadd.f32 %v256_v19, %v255_v17 }
  0xa6   :  { %v263_v25 = vadd.f32 %v262_v23, %v261_v18  ;;  %v236_v26 = vpop.f32.mrf.mxu0  ;;  %v251_v18 = vld [vmem:[#allocation8] ss:$8 sm:$0x3] }
  0xa7   :  { %v258_v27 = vrot.slane %v257_v24, 1  ;;  %v249_v28 = vpop.f32.mrf.mxu1  ;;  %v330_v26 = vperm.slane %v253_v22, 0 }
  0xa8   :  { %v264_v32 = vrot.slane %v263_v25, 1 }
  0xa9   :  { %v259_v33 = vadd.f32 %v258_v27, %v257_v24  ;;  %v331_v27 = vperm.slane %v253_v22, 1  ;;  %v1344_v22 = vld [vmem:[#allocation7 + $0xf8] sm:$0xff] }
  0xaa   :  { %v265_v34 = vadd.f32 %v264_v32, %v263_v25  ;;  %649 = vmatpush.bf16.msrb.mxu1 %v1344_v22 }
  0xab   :  { %v273_v35 = vmul.f32 %v1562_v31, %v259_v33 }
  0xac   :  { %v274_v38 = vmul.f32 %v1562_v31, %v265_v34 }
  0xad   :  { %v1566_v39 = vsub.f32 %v234_v12, %v273_v35 }
  0xae   :  { %v1568_v40 = vsub.f32 %v247_v14, %v274_v38 }
  0xaf   :  { %v277_v41 = vmul.f32 %v1566_v39, %v1566_v39 }
  0xb0   :  { %v278_v44 = vmul.f32 %v1568_v40, %v1568_v40 }
  0xb1   :  { %v279_v45 = vrot.slane %v277_v41, 4 }
  0xb2   :  { %v285_v46 = vrot.slane %v278_v44, 4 }
  0xb3   :  { %v280_v47 = vadd.f32 %v279_v45, %v277_v41  ;;  %v1336_v45 = vld [vmem:[#allocation7 + $0xb8] sm:$0xff] }
  0xb4   :  { %v286_v50 = vadd.f32 %v285_v46, %v278_v44  ;;  %554 = vmatpush.bf16.msrb.mxu0 %v1336_v45  ;;  %v1335_v46 = vld [vmem:[#allocation7 + $0xb0] sm:$0xff] }
  0xb5   :  { %v281_v51 = vrot.slane %v280_v47, 2 }
  0xb6   :  { %v287_v52 = vrot.slane %v286_v50, 2 }
  0xb7   :  { %v282_v53 = vadd.f32 %v281_v51, %v280_v47  ;;  %v1334_v51 = vld [vmem:[#allocation7 + $0xa8] sm:$0xff] }
  0xb8   :  { %v288_v56 = vadd.f32 %v287_v52, %v286_v50  ;;  %555 = vmatpush.bf16.msrb.mxu0 %v1335_v46 }
  0xb9   :  { %v283_v57 = vrot.slane %v282_v53, 1 }
  0xba   :  { %v289_v58 = vrot.slane %v288_v56, 1 }
  0xbb   :  { %v284_v59 = vadd.f32 %v283_v57, %v282_v53  ;;  %v1332_v57 = vld [vmem:[#allocation7 + $0x98] sm:$0xff] }
  0xbc   :  { %v290_v62 = vadd.f32 %v289_v58, %v288_v56  ;;  %556 = vmatpush.bf16.msrb.mxu0 %v1334_v51 }
  0xbd   :  { %v291_v63 = vmul.f32 %v284_v59, %v1562_v31 }
  0xbe   :  { %v292_v2 = vmul.f32 %v290_v62, %v1562_v31 }
  0xbf   :  { %v293_v3 = vadd.f32 1e-05, %v291_v63  ;;  %v1330_v63 = vld [vmem:[#allocation7 + $0x88] sm:$0xff] }
  0xc0   :  { %v294_v4 = vadd.f32 1e-05, %v292_v2  ;;  %557 = vmatpush.bf16.msrb.mxu0 %v1333_v54 }
  0xc1   :  { %1375 = vrsqrt.f32 %v293_v3  ;;  %vm301_vm6 = vweird.f32 %v293_v3 }
  0xc2   :  { %1377 = vrsqrt.f32 %v294_v4  ;;  %vm311_vm4 = vweird.f32 %v294_v4 }
  0xc4   :  { %558 = vmatpush.bf16.msrb.mxu0 %v1332_v57 }
  0xc7   :  { %v1376_v5 = vpop.eup %1375 }
  0xc8   :  { %v1378_v6 = vpop.eup %1377  ;;  %v296_v7 = vmul.f32 %v1376_v5, %v293_v3  ;;  %vm302_vm3 = vweird.f32 %v1376_v5  ;;  %559 = vmatpush.bf16.msrb.mxu0 %v1331_v60 }
  0xc9   :  { %v306_v8 = vmul.f32 %v1378_v6, %v294_v4  ;;  %vm312_vm2 = vweird.f32 %v1378_v6  ;;  %vm303_vm8 = vmor %vm301_vm6, %vm302_vm3 }
  0xca   :  { %v297_v9 = vmul.f32 %v1376_v5, %v296_v7  ;;  %vm313_vm5 = vmor %vm311_vm4, %vm312_vm2 }
  0xcb   :  { %v307_v10 = vmul.f32 %v1378_v6, %v306_v8 }
  0xcc   :  { %v298_v11 = vmul.f32 0.5, %v297_v9  ;;  %560 = vmatpush.bf16.msrb.mxu0 %v1330_v63  ;;  %v1224_v63 = vld [vmem:[#allocation5 + $0x80] sm:$0xf] }
  0xcd   :  { %v308_v12 = vmul.f32 0.5, %v307_v10 }
  0xce   :  { %v299_v13 = vsub.f32 1.5, %v298_v11  ;;  %v468_v11 = vld [vmem:[#allocation8 + $0x2] ss:$0 sm:$0xff] }
  0xcf   :  { %v309_v14 = vsub.f32 1.5, %v308_v12 }
  0xd0   :  { %v300_v15 = vmul.f32 %v1376_v5, %v299_v13  ;;  %561 = vmatpush.bf16.msrb.mxu0 %v1329_v1  ;;  %v1311_v1 = vld [vmem:[#allocation5 + $0x84] sm:$0xf] }
  0xd1   :  { %v310_v16 = vmul.f32 %v1378_v6, %v309_v14 }
  0xd2   :  { %v304_v20 = vsel %vm303_vm8, %v1376_v5, %v300_v15  ;;  %v469_v15 = vld [vmem:[#allocation8 + $0x3] ss:$0 sm:$0xff] }
  0xd3   :  { %v314_v17 = vsel %vm313_vm5, %v1378_v6, %v310_v16 }
  0xd4   :  { %v317_v19 = vrot.slane %v314_v17, 7  ;;  %v502_v17 = vstv %s1100_s4 }
  0xd6   :  { %v319_v21 = vsel %vm318_vm7, %v304_v20, %v317_v19 }
  0xd7   :  { %v321_v23 = vmul.f32 %v319_v21, %v251_v18 }
  0xd9   :  { %v324_v24 = vperm.slane %v321_v23, 1  ;;  %v323_v25 = vperm.slane %v321_v23, 0 }
  0xdb   :  { %v328_v28 = vmul.f32 %v324_v24, %v1568_v40  ;;  %v327_v29 = vmul.f32 %v323_v25, %v1566_v39  ;;  %v1343_v24 = vld [vmem:[#allocation7 + $0xf0] sm:$0xff] }
  0xdc   :  { %650 = vmatpush.bf16.msrb.mxu1 %v1343_v24  ;;  %v1200_v24 = vld [vmem:[#allocation5 + $0x50] sm:$0xf] }
  0xdd   :  { %v334_v32 = vadd.f32 %v330_v26, %v327_v29  ;;  %v335_v33 = vadd.f32 %v331_v27, %v328_v28  ;;  %v1342_v27 = vld [vmem:[#allocation7 + $0xe8] sm:$0xff] }
  0xdf   :  { %vm337_vm9 = vcmp.ge.f32.partialorder %v334_v32, 0.0  ;;  %v340_v34 = vmul.f32 %v339_v30, %v334_v32  ;;  %vm338_vm10 = vcmp.ge.f32.partialorder %v335_v33, 0.0  ;;  %v341_v35 = vmul.f32 %v339_v30, %v335_v33 }
  0xe0   :  { %651 = vmatpush.bf16.msrb.mxu1 %v1342_v27 }
  0xe1   :  { %v342_v36 = vsel %vm337_vm9, %v334_v32, %v340_v34  ;;  %v343_v37 = vsel %vm338_vm10, %v335_v33, %v341_v35  ;;  %v1341_v32 = vld [vmem:[#allocation7 + $0xe0] sm:$0xff]  ;;  %v1340_v35 = vld [vmem:[#allocation7 + $0xd8] sm:$0xff] }
  0xe2   :  { %v344_v38 = vpack.c.bf16 %v342_v36, %v342_v36  ;;  %v345_v41 = vpack.c.bf16 %v343_v37, %v343_v37 }
  0xe4   :  { %450 = vmatmul.bf16.vlgmr.msra.gmra.mxu2 %v344_v38  ;;  %463 = vmatmul.bf16.vlgmr.msra.gmra.mxu3 %v345_v41  ;;  %v1339_v38 = vld [vmem:[#allocation7 + $0xd0] sm:$0xff] }
  0xe5   :  { %652 = vmatpush.bf16.msrb.mxu1 %v1341_v32 }
  0xe9   :  { %653 = vmatpush.bf16.msrb.mxu1 %v1340_v35  ;;  %v1303_v35 = vld [vmem:[#allocation5 + $0x44] sm:$0xf] }
  0xed   :  { %654 = vmatpush.bf16.msrb.mxu1 %v1339_v38  ;;  %v1194_v38 = vld [vmem:[#allocation5 + $0x48] sm:$0xf0] }
 0x167   :  { %v451_v42 = vpop.f32.mrf.mxu2  ;;  %v464_v43 = vpop.f32.mrf.mxu3 }
 0x168   :  { %v465_v44 = vadd.f32 %v464_v43, %v451_v42  ;;  %v1338_v43 = vld [vmem:[#allocation7 + $0xc8] sm:$0xff] }
 0x169   :  { %655 = vmatpush.bf16.msrb.mxu1 %v1338_v43  ;;  %v1184_v43 = vld [vmem:[#allocation5 + $0x30] sm:$0xf] }
 0x16a   :  { %v470_v40 = vrot.slane %v465_v44, 4 }
 0x16c   :  { %v471_v39 = vadd.f32 %v470_v40, %v465_v44  ;;  %v1337_v40 = vld [vmem:[#allocation7 + $0xc0] sm:$0xff] }
 0x16d   :  { %656 = vmatpush.bf16.msrb.mxu1 %v1337_v40 }
 0x16e   :  { %v472_v47 = vrot.slane %v471_v39, 2 }
 0x16f   :  { %v453_v48 = vpop.f32.mrf.mxu2  ;;  %v466_v49 = vpop.f32.mrf.mxu3 }
 0x170   :  { %v473_v50 = vadd.f32 %v472_v47, %v471_v39 }
 0x172   :  { %v474_v52 = vrot.slane %v473_v50, 1 }
 0x174   :  { %v475_v53 = vadd.f32 %v474_v52, %v473_v50 }
 0x176   :  { %v476_v55 = vmul.f32 %v475_v53, %v1562_v31 }
 0x178   :  { %v477_v56 = vsub.f32 %v465_v44, %v476_v55  ;;  %v567_v55 = vld [vmem:[#allocation8 + $0x4] ss:$0 sm:$0xff] }
 0x17a   :  { %v478_v58 = vmul.f32 %v477_v56, %v477_v56 }
 0x17c   :  { %v479_v59 = vrot.slane %v478_v58, 4 }
 0x17e   :  { %v480_v61 = vadd.f32 %v479_v59, %v478_v58  ;;  %v568_v59 = vld [vmem:[#allocation8 + $0x5] ss:$0 sm:$0xff] }
 0x180   :  { %v481_v62 = vrot.slane %v480_v61, 2 }
 0x182   :  { %v482_v0 = vadd.f32 %v481_v62, %v480_v61 }
 0x184   :  { %v483_v2 = vrot.slane %v482_v0, 1 }
 0x186   :  { %v484_v3 = vadd.f32 %v483_v2, %v482_v0  ;;  %v1312_v0 = vld [vmem:[#allocation5 + $0x84] sm:$0xf0] }
 0x187   :  { %v1225_v2 = vor.u32 %v1312_v0, %v1224_v63 }
 0x188   :  { %v485_v4 = vmul.f32 %v484_v3, %v1562_v31  ;;  %v1226_v3 = vld [vmem:[#allocation5 + $0x88] sm:$0xf0] }
 0x189   :  { %780 = vmatpush.bf16.msrb.mxu2 %v1225_v2 }
 0x18a   :  { %v486_v5 = vadd.f32 1e-05, %v485_v4 }
 0x18c   :  { %1379 = vrsqrt.f32 %v486_v5  ;;  %vm493_vm12 = vweird.f32 %v486_v5 }
 0x192   :  { %v1380_v6 = vpop.eup %1379 }
 0x193   :  { %v488_v7 = vmul.f32 %v1380_v6, %v486_v5  ;;  %vm494_vm11 = vweird.f32 %v1380_v6  ;;  %v1229_v5 = vor.u32 %v1311_v1, %v1226_v3 }
 0x194   :  { %vm495_vm13 = vmor %vm493_vm12, %vm494_vm11 }
 0x195   :  { %v489_v8 = vmul.f32 %v1380_v6, %v488_v7  ;;  %793 = vmatpush.bf16.msrb.mxu3 %v1229_v5  ;;  %v1216_v7 = vld [vmem:[#allocation5 + $0x70] sm:$0xf] }
 0x197   :  { %v490_v9 = vmul.f32 0.5, %v489_v8  ;;  %v1310_v8 = vld [vmem:[#allocation5 + $0x74] sm:$0xf0] }
 0x199   :  { %v491_v10 = vsub.f32 1.5, %v490_v9  ;;  %v1309_v9 = vld [vmem:[#allocation5 + $0x74] sm:$0xf] }
 0x19b   :  { %v492_v12 = vmul.f32 %v1380_v6, %v491_v10 }
 0x19d   :  { %v496_v13 = vsel %vm495_vm13, %v1380_v6, %v492_v12  ;;  %v1218_v12 = vld [vmem:[#allocation5 + $0x78] sm:$0xf0] }
 0x19e   :  { %v497_v14 = vmul.f32 %v496_v13, %v468_v11  ;;  %v1217_v11 = vor.u32 %v1310_v8, %v1216_v7  ;;  %v1221_v13 = vor.u32 %v1309_v9, %v1218_v12  ;;  %v662_v8 = vld [vmem:[#allocation8 + $0x6] ss:$0 sm:$0xff]  ;;  %v663_v12 = vld [vmem:[#allocation8 + $0x7] ss:$0 sm:$0xff] }
 0x1a0   :  { %v498_v16 = vmul.f32 %v497_v14, %v477_v56  ;;  %781 = vmatpush.bf16.msrb.mxu2 %v1217_v11  ;;  %794 = vmatpush.bf16.msrb.mxu3 %v1221_v13 }
 0x1a2   :  { %v499_v18 = vadd.f32 %v498_v16, %v469_v15  ;;  %v1208_v15 = vld [vmem:[#allocation5 + $0x60] sm:$0xf]  ;;  %v1308_v16 = vld [vmem:[#allocation5 + $0x64] sm:$0xf0] }
 0x1a4   :  { %vm501_vm14 = vcmp.ge.f32.partialorder %v499_v18, 0.0  ;;  %v503_v19 = vmul.f32 %v502_v17, %v499_v18  ;;  %v1307_v17 = vld [vmem:[#allocation5 + $0x64] sm:$0xf] }
 0x1a6   :  { %v504_v20 = vsel %vm501_vm14, %v499_v18, %v503_v19  ;;  %v1209_v19 = vor.u32 %v1308_v16, %v1208_v15 }
 0x1a7   :  { %v505_v21 = vpack.c.bf16 %v504_v20, %v504_v20  ;;  %v1210_v20 = vld [vmem:[#allocation5 + $0x68] sm:$0xf0] }
 0x1a8   :  { %v1213_v22 = vor.u32 %v1307_v17, %v1210_v20  ;;  %782 = vmatpush.bf16.msrb.mxu2 %v1209_v19 }
 0x1a9   :  { %562 = vmatmul.bf16.vlgmr.msrb.gmra.mxu0 %v505_v21 }
 0x1aa   :  { %795 = vmatpush.bf16.msrb.mxu3 %v1213_v22 }
 0x226   :  { %v563_v23 = vpop.f32.mrf.mxu0 }
 0x227   :  { %v569_v25 = vrot.slane %v563_v23, 4 }
 0x229   :  { %v570_v26 = vadd.f32 %v569_v25, %v563_v23  ;;  %v1306_v25 = vld [vmem:[#allocation5 + $0x54] sm:$0xf0] }
 0x22b   :  { %v571_v28 = vrot.slane %v570_v26, 2 }
 0x22d   :  { %v572_v29 = vadd.f32 %v571_v28, %v570_v26  ;;  %v1305_v26 = vld [vmem:[#allocation5 + $0x54] sm:$0xf]  ;;  %v1201_v28 = vor.u32 %v1306_v25, %v1200_v24 }
 0x22e   :  { %v565_v30 = vpop.f32.mrf.mxu0 }
 0x22f   :  { %v573_v33 = vrot.slane %v572_v29, 1  ;;  %783 = vmatpush.bf16.msrb.mxu2 %v1201_v28  ;;  %v1360_v28 = vld [vmem:[#allocation7 + $0x178] sm:$0xff] }
 0x230   :  { %1004 = vmatpush.bf16.msra.mxu1 %v1360_v28 }
 0x231   :  { %v574_v34 = vadd.f32 %v573_v33, %v572_v29  ;;  %v1202_v29 = vld [vmem:[#allocation5 + $0x58] sm:$0xf0]  ;;  %v1192_v33 = vld [vmem:[#allocation5 + $0x40] sm:$0xf] }
 0x232   :  { %v1205_v30 = vor.u32 %v1305_v26, %v1202_v29 }
 0x233   :  { %v575_v36 = vmul.f32 %v574_v34, %v1562_v31  ;;  %v1304_v34 = vld [vmem:[#allocation5 + $0x44] sm:$0xf0] }
 0x234   :  { %796 = vmatpush.bf16.msrb.mxu3 %v1205_v30 }
 0x235   :  { %v576_v37 = vsub.f32 %v563_v23, %v575_v36 }
 0x237   :  { %v577_v41 = vmul.f32 %v576_v37, %v576_v37 }
 0x239   :  { %v578_v42 = vrot.slane %v577_v41, 4 }
 0x23b   :  { %v579_v44 = vadd.f32 %v578_v42, %v577_v41  ;;  %v1197_v41 = vor.u32 %v1303_v35, %v1194_v38 }
 0x23d   :  { %v580_v45 = vrot.slane %v579_v44, 2  ;;  %797 = vmatpush.bf16.msrb.mxu3 %v1197_v41 }
 0x23f   :  { %v581_v39 = vadd.f32 %v580_v45, %v579_v44  ;;  %v1302_v44 = vld [vmem:[#allocation5 + $0x34] sm:$0xf0]  ;;  %v1301_v45 = vld [vmem:[#allocation5 + $0x34] sm:$0xf] }
 0x241   :  { %v582_v46 = vrot.slane %v581_v39, 1 }
 0x243   :  { %v583_v47 = vadd.f32 %v582_v46, %v581_v39  ;;  %v1185_v39 = vor.u32 %v1302_v44, %v1184_v43  ;;  %v1186_v46 = vld [vmem:[#allocation5 + $0x38] sm:$0xf0] }
 0x244   :  { %v1350_v44 = vld [vmem:[#allocation7 + $0x128] sm:$0xff] }
 0x245   :  { %v584_v48 = vmul.f32 %v583_v47, %v1562_v31  ;;  %v1189_v47 = vor.u32 %v1301_v45, %v1186_v46  ;;  %v1358_v45 = vld [vmem:[#allocation7 + $0x168] sm:$0xff] }
 0x247   :  { %v585_v49 = vadd.f32 1e-05, %v584_v48  ;;  %798 = vmatpush.bf16.msrb.mxu3 %v1189_v47 }
 0x249   :  { %1381 = vrsqrt.f32 %v585_v49  ;;  %vm592_vm0 = vweird.f32 %v585_v49 }
 0x24f   :  { %v1382_v50 = vpop.eup %1381 }
 0x250   :  { %v587_v51 = vmul.f32 %v1382_v50, %v585_v49  ;;  %vm593_vm15 = vweird.f32 %v1382_v50  ;;  %v1176_v49 = vld [vmem:[#allocation5 + $0x20] sm:$0xf] }
 0x251   :  { %vm594_vm1 = vmor %vm592_vm0, %vm593_vm15 }
 0x252   :  { %v588_v52 = vmul.f32 %v1382_v50, %v587_v51  ;;  %v1299_v51 = vld [vmem:[#allocation5 + $0x24] sm:$0xf] }
 0x254   :  { %v589_v53 = vmul.f32 0.5, %v588_v52 }
 0x256   :  { %v590_v54 = vsub.f32 1.5, %v589_v53 }
 0x258   :  { %v591_v56 = vmul.f32 %v1382_v50, %v590_v54  ;;  %v1178_v54 = vld [vmem:[#allocation5 + $0x28] sm:$0xf0] }
 0x25a   :  { %v595_v57 = vsel %vm594_vm1, %v1382_v50, %v591_v56  ;;  %v1300_v50 = vld [vmem:[#allocation5 + $0x24] sm:$0xf0] }
 0x25b   :  { %v596_v58 = vmul.f32 %v595_v57, %v567_v55  ;;  %v1177_v53 = vor.u32 %v1300_v50, %v1176_v49  ;;  %v1181_v55 = vor.u32 %v1299_v51, %v1178_v54  ;;  %v1168_v57 = vld [vmem:[#allocation5 + $0x10] sm:$0xf]  ;;  %v1348_v54 = vld [vmem:[#allocation7 + $0x118] sm:$0xff] }
 0x25c   :  { %v1357_v49 = vld [vmem:[#allocation7 + $0x160] sm:$0xff] }
 0x25d   :  { %v597_v60 = vmul.f32 %v596_v58, %v576_v37  ;;  %v1193_v37 = vor.u32 %v1304_v34, %v1192_v33  ;;  %v1298_v58 = vld [vmem:[#allocation5 + $0x14] sm:$0xf0]  ;;  %799 = vmatpush.bf16.msrb.mxu3 %v1181_v55  ;;  %v1356_v55 = vld [vmem:[#allocation7 + $0x158] sm:$0xff] }
 0x25f   :  { %v598_v61 = vadd.f32 %v597_v60, %v568_v59  ;;  %784 = vmatpush.bf16.msrb.mxu2 %v1193_v37  ;;  %v1297_v59 = vld [vmem:[#allocation5 + $0x14] sm:$0xf]  ;;  %v1169_v60 = vor.u32 %v1298_v58, %v1168_v57  ;;  %v1359_v37 = vld [vmem:[#allocation7 + $0x170] sm:$0xff] }
 0x260   :  { %1005 = vmatpush.bf16.msra.mxu1 %v1359_v37 }
 0x261   :  { %599 = vst [vmem:[%s1611_s5] sm:$0xff] %v598_v61  ;;  %v600_v62 = vpack.c.bf16 %v598_v61, %v598_v61  ;;  %v1170_v61 = vld [vmem:[#allocation5 + $0x18] sm:$0xf0] }
 0x262   :  { %v1173_v63 = vor.u32 %v1297_v59, %v1170_v61  ;;  %v1355_v61 = vld [vmem:[#allocation7 + $0x150] sm:$0xff] }
 0x263   :  { %657 = vmatmul.bf16.vlgmr.msrb.gmra.mxu1 %v600_v62  ;;  %785 = vmatpush.bf16.msrb.mxu2 %v1185_v39 }
 0x264   :  { %800 = vmatpush.bf16.msrb.mxu3 %v1173_v63  ;;  %1006 = vmatpush.bf16.msra.mxu1 %v1358_v45 }
 0x267   :  { %786 = vmatpush.bf16.msrb.mxu2 %v1177_v53 }
 0x268   :  { %1007 = vmatpush.bf16.msra.mxu1 %v1357_v49 }
 0x26b   :  { %787 = vmatpush.bf16.msrb.mxu2 %v1169_v60  ;;  %v1347_v60 = vld [vmem:[#allocation7 + $0x110] sm:$0xff] }
 0x26c   :  { %1008 = vmatpush.bf16.msra.mxu1 %v1356_v55 }
 0x270   :  { %1009 = vmatpush.bf16.msra.mxu1 %v1355_v61 }
 0x2e0   :  { %v658_v4 = vpop.f32.mrf.mxu1 }
 0x2e1   :  { %v664_v6 = vrot.slane %v658_v4, 4 }
 0x2e3   :  { %v665_v10 = vadd.f32 %v664_v6, %v658_v4 }
 0x2e5   :  { %v666_v14 = vrot.slane %v665_v10, 2 }
 0x2e7   :  { %v667_v18 = vadd.f32 %v666_v14, %v665_v10  ;;  %v696_v14 = vstv %s1165_s22 }
 0x2e8   :  { %v660_v21 = vpop.f32.mrf.mxu1 }
 0x2e9   :  { %v668_v23 = vrot.slane %v667_v18, 1 }
 0x2eb   :  { %v669_v27 = vadd.f32 %v668_v23, %v667_v18 }
 0x2ed   :  { %v670_v32 = vmul.f32 %v669_v27, %v1562_v31  ;;  %v1352_v27 = vld [vmem:[#allocation7 + $0x138] sm:$0xff] }
 0x2ee   :  { %991 = vmatpush.bf16.msra.mxu0 %v1352_v27 }
 0x2ef   :  { %v671_v36 = vsub.f32 %v658_v4, %v670_v32 }
 0x2f1   :  { %v672_v42 = vmul.f32 %v671_v36, %v671_v36 }
 0x2f3   :  { %v673_v40 = vrot.slane %v672_v42, 4 }
 0x2f5   :  { %v674_v48 = vadd.f32 %v673_v40, %v672_v42 }
 0x2f7   :  { %v675_v52 = vrot.slane %v674_v48, 2 }
 0x2f9   :  { %v676_v56 = vadd.f32 %v675_v52, %v674_v48  ;;  %v1349_v48 = vld [vmem:[#allocation7 + $0x120] sm:$0xff] }
 0x2fb   :  { %v677_v62 = vrot.slane %v676_v56, 1 }
 0x2fd   :  { %v678_v0 = vadd.f32 %v677_v62, %v676_v56 }
 0x2ff   :  { %v679_v1 = vmul.f32 %v678_v0, %v1562_v31 }
 0x301   :  { %v680_v2 = vadd.f32 1e-05, %v679_v1 }
 0x303   :  { %1383 = vrsqrt.f32 %v680_v2  ;;  %vm687_vm3 = vweird.f32 %v680_v2 }
 0x309   :  { %v1384_v3 = vpop.eup %1383 }
 0x30a   :  { %v682_v4 = vmul.f32 %v1384_v3, %v680_v2  ;;  %vm688_vm2 = vweird.f32 %v1384_v3  ;;  %v1346_v2 = vld [vmem:[#allocation7 + $0x108] sm:$0xff] }
 0x30b   :  { %vm689_vm4 = vmor %vm687_vm3, %vm688_vm2 }
 0x30c   :  { %v683_v5 = vmul.f32 %v1384_v3, %v682_v4 }
 0x30e   :  { %v684_v6 = vmul.f32 0.5, %v683_v5 }
 0x310   :  { %v685_v7 = vsub.f32 1.5, %v684_v6 }
 0x312   :  { %v686_v9 = vmul.f32 %v1384_v3, %v685_v7 }
 0x314   :  { %v690_v10 = vsel %vm689_vm4, %v1384_v3, %v686_v9  ;;  %v1354_v3 = vld [vmem:[#allocation7 + $0x148] sm:$0xff]  ;;  %v1353_v9 = vld [vmem:[#allocation7 + $0x140] sm:$0xff] }
 0x315   :  { %v691_v11 = vmul.f32 %v690_v10, %v662_v8  ;;  %1010 = vmatpush.bf16.msra.mxu1 %v1354_v3  ;;  %v1345_v8 = vld [vmem:[#allocation7 + $0x100] sm:$0xff] }
 0x317   :  { %v692_v13 = vmul.f32 %v691_v11, %v671_v36  ;;  %v1351_v36 = vld [vmem:[#allocation7 + $0x130] sm:$0xff] }
 0x318   :  { %992 = vmatpush.bf16.msra.mxu0 %v1351_v36 }
 0x319   :  { %v693_v15 = vadd.f32 %v692_v13, %v663_v12  ;;  %1011 = vmatpush.bf16.msra.mxu1 %v1353_v9 }
 0x31b   :  { %vm695_vm5 = vcmp.ge.f32.partialorder %v693_v15, 0.0  ;;  %v697_v16 = vmul.f32 %v696_v14, %v693_v15 }
 0x31c   :  { %993 = vmatpush.bf16.msra.mxu0 %v1350_v44 }
 0x31d   :  { %v698_v17 = vsel %vm695_vm5, %v693_v15, %v697_v16 }
 0x31e   :  { %v699_v18 = vpack.c.bf16 %v698_v17, %v698_v17 }
 0x320   :  { %788 = vmatmul.bf16.vlgmr.msrb.gmra.mxu2 %v699_v18  ;;  %801 = vmatmul.bf16.vlgmr.msrb.gmra.mxu3 %v699_v18 }
 0x321   :  { %994 = vmatpush.bf16.msra.mxu0 %v1349_v48 }
 0x325   :  { %995 = vmatpush.bf16.msra.mxu0 %v1348_v54 }
 0x329   :  { %996 = vmatpush.bf16.msra.mxu0 %v1347_v60 }
 0x32d   :  { %997 = vmatpush.bf16.msra.mxu0 %v1346_v2 }
 0x331   :  { %998 = vmatpush.bf16.msra.mxu0 %v1345_v8 }
 0x3a3   :  { %v789_v19 = vpop.f32.mrf.mxu2  ;;  %v802_v20 = vpop.f32.mrf.mxu3 }
 0x3a4   :  { %v810_v21 = vrot.slane %v789_v19, 4  ;;  %v816_v22 = vrot.slane %v802_v20, 4 }
 0x3a6   :  { %v811_v23 = vadd.f32 %v810_v21, %v789_v19  ;;  %v817_v24 = vadd.f32 %v816_v22, %v802_v20  ;;  %v807_v22 = vld [vmem:[#allocation8 + $0x10] ss:$8 sm:$0x3] }
 0x3a8   :  { %v812_v25 = vrot.slane %v811_v23, 2  ;;  %v818_v26 = vrot.slane %v817_v24, 2 }
 0x3aa   :  { %v813_v29 = vadd.f32 %v812_v25, %v811_v23  ;;  %v819_v30 = vadd.f32 %v818_v26, %v817_v24  ;;  %v809_v25 = vld [vmem:[#allocation8 + $0x11] ss:$8 sm:$0x3] }
 0x3ab   :  { %v791_v32 = vpop.f32.mrf.mxu2  ;;  %v804_v33 = vpop.f32.mrf.mxu3 }
 0x3ac   :  { %v814_v34 = vrot.slane %v813_v29, 1  ;;  %v820_v35 = vrot.slane %v819_v30, 1  ;;  %v879_v32 = vperm.slane %v809_v25, 1 }
 0x3ae   :  { %v815_v38 = vadd.f32 %v814_v34, %v813_v29  ;;  %v821_v41 = vadd.f32 %v820_v35, %v819_v30  ;;  %v878_v30 = vperm.slane %v809_v25, 0  ;;  %v887_v35 = vstv %s1230_s23 }
 0x3b0   :  { %v822_v42 = vmul.f32 %v815_v38, %v1562_v31  ;;  %v823_v43 = vmul.f32 %v821_v41, %v1562_v31 }
 0x3b2   :  { %v1590_v40 = vsub.f32 %v789_v19, %v822_v42  ;;  %v1592_v39 = vsub.f32 %v802_v20, %v823_v43 }
 0x3b4   :  { %v826_v46 = vmul.f32 %v1590_v40, %v1590_v40  ;;  %v827_v47 = vmul.f32 %v1592_v39, %v1592_v39 }
 0x3b6   :  { %v828_v50 = vrot.slane %v826_v46, 4  ;;  %v834_v51 = vrot.slane %v827_v47, 4 }
 0x3b8   :  { %v829_v52 = vadd.f32 %v828_v50, %v826_v46  ;;  %v835_v53 = vadd.f32 %v834_v51, %v827_v47  ;;  %v894_v46 = vld [vmem:[#allocation8 + $0x12] ss:$0 sm:$0xff] }
 0x3ba   :  { %v830_v56 = vrot.slane %v829_v52, 2  ;;  %v836_v57 = vrot.slane %v835_v53, 2 }
 0x3bc   :  { %v831_v58 = vadd.f32 %v830_v56, %v829_v52  ;;  %v837_v59 = vadd.f32 %v836_v57, %v835_v53 }
 0x3be   :  { %v832_v62 = vrot.slane %v831_v58, 1  ;;  %v838_v63 = vrot.slane %v837_v59, 1 }
 0x3c0   :  { %v833_v0 = vadd.f32 %v832_v62, %v831_v58  ;;  %v839_v1 = vadd.f32 %v838_v63, %v837_v59 }
 0x3c2   :  { %v840_v4 = vmul.f32 %v833_v0, %v1562_v31  ;;  %v841_v5 = vmul.f32 %v839_v1, %v1562_v31 }
 0x3c4   :  { %v842_v6 = vadd.f32 1e-05, %v840_v4  ;;  %v843_v7 = vadd.f32 1e-05, %v841_v5 }
 0x3c6   :  { %1385 = vrsqrt.f32 %v842_v6  ;;  %vm860_vm9 = vweird.f32 %v843_v7  ;;  %vm850_vm11 = vweird.f32 %v842_v6 }
 0x3c7   :  { %1387 = vrsqrt.f32 %v843_v7 }
 0x3cc   :  { %v1386_v10 = vpop.eup %1385 }
 0x3cd   :  { %v1388_v11 = vpop.eup %1387  ;;  %v845_v12 = vmul.f32 %v1386_v10, %v842_v6  ;;  %vm851_vm8 = vweird.f32 %v1386_v10 }
 0x3ce   :  { %v855_v13 = vmul.f32 %v1388_v11, %v843_v7  ;;  %vm861_vm6 = vweird.f32 %v1388_v11  ;;  %vm852_vm12 = vmor %vm850_vm11, %vm851_vm8 }
 0x3cf   :  { %v846_v14 = vmul.f32 %v1386_v10, %v845_v12  ;;  %vm862_vm10 = vmor %vm860_vm9, %vm861_vm6 }
 0x3d0   :  { %v856_v15 = vmul.f32 %v1388_v11, %v855_v13 }
 0x3d1   :  { %v847_v16 = vmul.f32 0.5, %v846_v14 }
 0x3d2   :  { %v857_v17 = vmul.f32 0.5, %v856_v15 }
 0x3d3   :  { %v848_v18 = vsub.f32 1.5, %v847_v16 }
 0x3d4   :  { %v858_v31 = vsub.f32 1.5, %v857_v17 }
 0x3d5   :  { %v849_v19 = vmul.f32 %v1386_v10, %v848_v18 }
 0x3d6   :  { %v859_v20 = vmul.f32 %v1388_v11, %v858_v31 }
 0x3d7   :  { %v853_v24 = vsel %vm852_vm12, %v1386_v10, %v849_v19 }
 0x3d8   :  { %v863_v21 = vsel %vm862_vm10, %v1388_v11, %v859_v20 }
 0x3d9   :  { %v866_v23 = vrot.slane %v863_v21, 7 }
 0x3db   :  { %v867_v26 = vsel %vm318_vm7, %v853_v24, %v866_v23 }
 0x3dc   :  { %v869_v27 = vmul.f32 %v867_v26, %v807_v22 }
 0x3de   :  { %v871_v28 = vperm.slane %v869_v27, 0  ;;  %v872_v29 = vperm.slane %v869_v27, 1 }
 0x3e0   :  { %v875_v33 = vmul.f32 %v871_v28, %v1590_v40  ;;  %v876_v34 = vmul.f32 %v872_v29, %v1592_v39 }
 0x3e2   :  { %v883_v36 = vadd.f32 %v879_v32, %v876_v34  ;;  %v882_v37 = vadd.f32 %v878_v30, %v875_v33 }
 0x3e4   :  { %v889_v38 = vmul.f32 %v887_v35, %v883_v36  ;;  %vm885_vm13 = vcmp.ge.f32.partialorder %v882_v37, 0.0  ;;  %v888_v41 = vmul.f32 %v887_v35, %v882_v37  ;;  %vm886_vm14 = vcmp.ge.f32.partialorder %v883_v36, 0.0 }
 0x3e6   :  { %v890_v42 = vsel %vm885_vm13, %v882_v37, %v888_v41  ;;  %v891_v43 = vsel %vm886_vm14, %v883_v36, %v889_v38 }
 0x3e7   :  { %v892_v44 = vpack.c.bf16 %v890_v42, %v890_v42  ;;  %v893_v45 = vpack.c.bf16 %v891_v43, %v891_v43 }
 0x3e9   :  { %999 = vmatmul.bf16.vlgmr.msra.gmra.mxu0 %v892_v44  ;;  %1012 = vmatmul.bf16.vlgmr.msra.gmra.mxu1 %v893_v45 }
 0x466   :  { %v1000_v47 = vpop.f32.mrf.mxu0  ;;  %v1013_v48 = vpop.f32.mrf.mxu1 }
 0x467   :  { %v1001_v49 = vadd.f32 %v1000_v47, %v894_v46 }
 0x469   :  { %v1014_v40 = vadd.f32 %v1013_v48, %v1001_v49 }
 0x46b   :  { %1017 = vst [vmem:[%s1611_s5 + $0x8] sm:$0xff] %v1014_v40 }
 0x46e   :  { %v1002_v39 = vpop.f32.mrf.mxu0  ;;  %v1015_v50 = vpop.f32.mrf.mxu1 }
 0x46f   :  { %1022 = vsyncpa [#allocation3], 1 }
 0x470   :  { %1023 = vsyncpa [#allocation6], 1 }
 0x471   :  { %1024 = vsyncpa [#allocation9], 1 }
 0x472   :  { %1025 = vsyncpa [#allocation4], 1 }

</bundles_post_ra>
